<compile_context>
chip_gen: v7x
topology: tpu7x:2x2x1
jax: 0.10.0
libtpu: 0.0.40
codegen_flags: <defaults>
</compile_context>

<pallas_src>
import functools
import math

import jax
import jax.numpy as jnp
from jax import lax
from jax.experimental import pallas as pl
from jax.experimental.pallas import tpu as pltpu


_IB = 8            # i-block: rows of the reduction axis per accumulator block
_JB = 8            # j-block: rows of the reduction axis per inner step
_CB = 128          # lane width of one compute slab (one vreg of lanes)
_J_UNROLL = 4      # unroll factor of the inner j loop
_TC_MAX = 2048     # cap on the lane-tile width handed to one grid step
_VMEM_FLOOR = 32 * 1024 * 1024


@functools.lru_cache(maxsize=None)
def _vmem_cap_bytes():
    """Generation-aware scoped-VMEM cap (review: don't size v5e/v6e for v7x)."""
    phys = 64 * 1024 * 1024
    try:
        phys = int(getattr(pltpu.get_tpu_info(), "vmem_capacity_bytes", phys))
    except Exception:
        pass
    if phys >= 100 * 1024 * 1024:      # v5e / v6e class: 128 MiB physical VMEM
        return 96 * 1024 * 1024
    return 48 * 1024 * 1024            # v7x class: 64 MiB per TensorCore


def _compiler_params(est_bytes):
    limit = int(min(_vmem_cap_bytes(), max(_VMEM_FLOOR, int(est_bytes * 1.25))))
    return pltpu.CompilerParams(
        dimension_semantics=("parallel",),
        vmem_limit_bytes=limit,
    )


def _sparsemax_sublane_kernel(x_ref, o_ref, z_ref, *, ib, jb, j_unroll):
    """Sparsemax along the first (sublane) axis of an (n, tc) tile.

    The tile is processed in 128-lane slabs; within a slab the pairwise
    (j, i, lanes) blocks are (jb, ib, cb) = (8, 8, 128) so the compare /
    select / accumulate chain stays in vregs and the j-reduction is plain
    VALU adds over the outer axis.
    """
    n, tc = x_ref.shape
    cb = z_ref.shape[1]                 # tc if tc <= 128 else 128
    n_slabs = tc // cb
    n_ib, i_rem = divmod(n, ib)
    n_jb, j_rem = divmod(n, jb)

    def jstep(zi, zjb):
        # zi: (isz, cb) "query" rows; zjb: (jsz, cb) "key" rows.  j sits on
        # the outer axis so the reduction below is vreg adds, not XLU.
        ge = zjb[:, None, :] >= zi[None, :, :]            # (jsz, isz, cb) bool
        gef = jnp.where(ge, 1.0, 0.0)                     # single fused select
        d_k = jnp.sum(gef, axis=0)                        # (isz, cb)
        d_s = jnp.sum(gef * zjb[:, None, :], axis=0)      # (isz, cb)
        return d_k, d_s

    def iblock(i0, isz):
        zi = z_ref[pl.ds(i0, isz), :]                     # (isz, cb)

        def jbody(c, carry):
            kb, sb = carry
            j0 = pl.multiple_of(c * jb, jb)
            d_k, d_s = jstep(zi, z_ref[pl.ds(j0, jb), :])
            return kb + d_k, sb + d_s

        kb = jnp.zeros((isz, cb), jnp.float32)
        sb = jnp.zeros((isz, cb), jnp.float32)
        if n_jb > 0:
            kb, sb = lax.fori_loop(0, n_jb, jbody, (kb, sb),
                                   unroll=min(j_unroll, n_jb))
        if j_rem:
            d_k, d_s = jstep(zi, z_ref[pl.ds(n_jb * jb, j_rem), :])
            kb, sb = kb + d_k, sb + d_s

        suppf = jnp.where(kb * zi > sb - 1.0, 1.0, 0.0)   # (isz, cb)
        dkz = jnp.sum(suppf, axis=0, keepdims=True)       # (1, cb)
        dss = jnp.sum(suppf * zi, axis=0, keepdims=True)  # (1, cb)
        return dkz, dss

    def slab_body(c0):
        # Shifted z computed once per slab into VMEM scratch, sliced below.
        xs = x_ref[:, pl.ds(c0, cb)].astype(jnp.float32)  # (n, cb)
        z_ref[...] = xs - jnp.max(xs, axis=0, keepdims=True)

        def ibody(c, carry):
            kz, ss = carry
            i0 = pl.multiple_of(c * ib, ib)
            dkz, dss = iblock(i0, ib)
            return kz + dkz, ss + dss

        kz = jnp.zeros((1, cb), jnp.float32)
        ss = jnp.zeros((1, cb), jnp.float32)
        if n_ib > 0:
            kz, ss = lax.fori_loop(0, n_ib, ibody, (kz, ss))
        if i_rem:
            dkz, dss = iblock(n_ib * ib, i_rem)
            kz, ss = kz + dkz, ss + dss

        tau = (ss - 1.0) / kz                             # k_z >= 1 always
        o_ref[:, pl.ds(c0, cb)] = jnp.maximum(
            z_ref[...] - tau, 0.0).astype(o_ref.dtype)

    if n_slabs <= 1:
        slab_body(0)
    else:
        @pl.loop(0, n_slabs)
        def _(s):
            slab_body(pl.multiple_of(s * cb, cb))


def _sparsemax_sublane(x2d):
    """Sparsemax over the FIRST axis of an (n, cols) array."""
    n, cols = x2d.shape
    itemsize = jnp.dtype(x2d.dtype).itemsize

    if cols <= 128:
        tc = cols                       # single narrow tile (full-dim block)
    else:
        # Lane-tile width: as large as the VMEM budget allows, but always
        # >= 2 grid blocks when cols >= 256 so both TensorCores of a
        # dual-core chip (v7x) get work (dimension_semantics=("parallel",)
        # shards grid steps); the extra grid step is ~0.35us on 1-TC chips.
        tile_budget = _vmem_cap_bytes() // 4
        tc_cap = tile_budget // max(4 * n * itemsize, 1)
        tc_cap = max(128, min(_TC_MAX, (tc_cap // 128) * 128))
        half = max(128, ((cols // 2) // 128) * 128)
        tc = min(tc_cap, half)
    cb = min(_CB, tc)
    grid = pl.cdiv(cols, tc)

    # Honest VMEM estimate (review): double-buffered in/out tiles + the
    # shifted-z slab scratch + ~4 live pairwise temporaries + accumulators.
    est = (4 * n * tc * itemsize            # in + out, double-buffered
           + n * cb * 4                     # shifted-z slab scratch
           + 4 * _JB * _IB * cb * 4         # pairwise compare/select/product
           + 8 * _IB * cb * 4)              # block accumulators / reductions

    kern = functools.partial(_sparsemax_sublane_kernel,
                             ib=_IB, jb=_JB, j_unroll=_J_UNROLL)
    return pl.pallas_call(
        kern,
        out_shape=jax.ShapeDtypeStruct((n, cols), x2d.dtype),
        grid_spec=pltpu.PrefetchScalarGridSpec(
            num_scalar_prefetch=0,
            grid=(grid,),
            in_specs=[pl.BlockSpec((n, tc), lambda i: (0, i))],
            out_specs=pl.BlockSpec((n, tc), lambda i: (0, i)),
            scratch_shapes=[pltpu.VMEM((n, cb), jnp.float32)],
        ),
        compiler_params=_compiler_params(est),
    )(x2d)


def sparsemax(x, dim=0):
    """Forward sparsemax along `dim` (matches the PyTorch module, fwd only)."""
    ndim = x.ndim
    if ndim == 0:
        return jnp.ones_like(x)
    d = dim % ndim
    n = x.shape[d]
    if n == 1:
        return jnp.ones_like(x)          # sparsemax over a singleton dim
    if ndim == 1:
        return _sparsemax_sublane(x.reshape(n, 1)).reshape(x.shape)
    if d == 0:
        # Module default: reduction already on the leading (sublane) axis,
        # independent columns stay lane-dense, no transpose needed.
        cols = math.prod(x.shape[1:])
        return _sparsemax_sublane(x.reshape(n, cols)).reshape(x.shape)
    if d == ndim - 1:
        # dim=-1: move the reduction onto sublanes so the independent rows
        # stay lane-dense (review: biggest lever for small n).  The HBM
        # transpose is negligible next to the O(n^2)-per-element compute.
        rows = math.prod(x.shape[:-1])
        out = _sparsemax_sublane(x.reshape(rows, n).T).T
        return out.reshape(x.shape)
    # General dim: one moveaxis (HBM transpose) to the front.
    xm = jnp.moveaxis(x, d, 0)
    cols = math.prod(xm.shape[1:])
    out = _sparsemax_sublane(xm.reshape(n, cols)).reshape(xm.shape)
    return jnp.moveaxis(out, 0, d)


class Sparsemax:
    """JAX/Pallas port of the PyTorch Sparsemax module (forward only)."""

    def __init__(self, dim=0):
        self.dim = dim

    def __call__(self, x):
        return sparsemax(x, self.dim)


def _sparsemax_ref(z, dim=0):
    """Pure-JAX reference matching the PyTorch sort-based implementation."""
    sorted_z = jnp.flip(jnp.sort(z, axis=dim), axis=dim)
    z_sum = jnp.cumsum(sorted_z, axis=dim) - 1.0
    shape = [1] * z.ndim
    shape[dim] = -1
    k = jnp.arange(1, z.shape[dim] + 1, dtype=z.dtype).reshape(shape)
    support = k * sorted_z > z_sum
    k_z = jnp.sum(support, axis=dim, keepdims=True)
    tau = jnp.take_along_axis(z_sum, k_z - 1, axis=dim) / k_z.astype(z.dtype)
    return jnp.clip(z - tau, 0.0, None)


if __name__ == "__main__":
    key = jax.random.PRNGKey(0)
    k1, k2, k3, k4, k5, k6 = jax.random.split(key, 6)

    # 1) Module default dim=0 (sublane path, no transpose).
    x1 = jax.random.normal(k1, (8, 32), dtype=jnp.float32)
    y1 = Sparsemax(dim=0)(x1)
    jax.block_until_ready(y1)
    r1 = _sparsemax_ref(x1, dim=0)
    assert y1.shape == x1.shape and y1.dtype == x1.dtype
    assert jnp.allclose(y1, r1, atol=1e-5), "dim=0 mismatch vs reference"
    assert jnp.allclose(jnp.sum(y1, axis=0), 1.0, atol=1e-5)
    assert bool(jnp.all(y1 >= 0.0))

    # 2) dim=-1 (wrapper transpose; small reduction size stays lane-dense).
    x2 = jax.random.normal(k2, (2, 4, 32), dtype=jnp.float32)
    y2 = Sparsemax(dim=-1)(x2)
    jax.block_until_ready(y2)
    r2 = _sparsemax_ref(x2, dim=-1)
    assert y2.shape == x2.shape and y2.dtype == x2.dtype
    assert jnp.allclose(y2, r2, atol=1e-5), "dim=-1 mismatch vs reference"
    assert jnp.allclose(jnp.sum(y2, axis=-1), 1.0, atol=1e-5)

    # 3) dim=1 with a wider reduction (n=512): exercises the blocked i/j loops
    #    and the unrolled inner fori.
    x3 = jax.random.normal(k3, (16, 512), dtype=jnp.float32) * 3.0
    y3 = Sparsemax(dim=1)(x3)
    jax.block_until_ready(y3)
    r3 = _sparsemax_ref(x3, dim=1)
    assert jnp.allclose(y3, r3, atol=1e-4), "n=512 mismatch vs reference"
    assert jnp.allclose(jnp.sum(y3, axis=1), 1.0, atol=1e-4)

    # 4) Middle dim + reduction size not a multiple of 8 (remainder blocks).
    x4 = jax.random.normal(k4, (4, 21, 10), dtype=jnp.float32)
    y4 = Sparsemax(dim=1)(x4)
    jax.block_until_ready(y4)
    r4 = _sparsemax_ref(x4, dim=1)
    assert jnp.allclose(y4, r4, atol=1e-5), "remainder-block mismatch"
    assert jnp.allclose(jnp.sum(y4, axis=1), 1.0, atol=1e-5)

    # 5) dim=0 with many columns (cols=320): multi-block grid (>=2 blocks for
    #    dual-core chips) with a ragged last lane block.
    x5 = jax.random.normal(k5, (32, 8, 40), dtype=jnp.float32)
    y5 = Sparsemax(dim=0)(x5)
    jax.block_until_ready(y5)
    r5 = _sparsemax_ref(x5, dim=0)
    assert jnp.allclose(y5, r5, atol=1e-5), "multi-block mismatch vs reference"
    assert jnp.allclose(jnp.sum(y5, axis=0), 1.0, atol=1e-5)

    # 6) Explicit ties (review correctness concern): quantized values with
    #    exact duplicates along the reduction dim.
    x6 = jnp.round(jax.random.normal(k6, (8, 16), dtype=jnp.float32) * 2.0) / 2.0
    y6 = Sparsemax(dim=0)(x6)
    jax.block_until_ready(y6)
    r6 = _sparsemax_ref(x6, dim=0)
    assert jnp.allclose(y6, r6, atol=1e-5), "ties mismatch vs reference"
    assert jnp.allclose(jnp.sum(y6, axis=0), 1.0, atol=1e-5)

    print("KERNEL_OK")
</pallas_src>

<mosaic_0001>
module attributes {stable_mosaic.version = 11 : i64} {
  func.func @_sparsemax_sublane_kernel(%arg0: i32, %arg1: memref<8x32xf32, #tpu.memory_space<vmem>>, %arg2: memref<8x32xf32, #tpu.memory_space<vmem>>, %arg3: memref<8x32xf32, #tpu.memory_space<vmem>>) attributes {dimension_semantics = [#tpu.dimension_semantics<parallel>], iteration_bounds = array<i64: 1>, scalar_prefetch = 0 : i64, scratch_operands = 1 : i64, tpu.core_type = #tpu.core_type<tc>, window_params = [{transform_indices = @transform_0, window_bounds = array<i64: 8, 32>}, {transform_indices = @transform_1, window_bounds = array<i64: 8, 32>}]} {
    %c0 = arith.constant 0 : index
    %c0_0 = arith.constant 0 : index
    %0 = vector.load %arg1[%c0, %c0_0] : memref<8x32xf32, #tpu.memory_space<vmem>>, vector<8x32xf32>
    %cst = arith.constant dense<0xFF800000> : vector<32xf32>
    %1 = vector.multi_reduction <maximumf>, %0, %cst [0] : vector<8x32xf32> to vector<32xf32>
    %2 = vector.shape_cast %1 : vector<32xf32> to vector<1x32xf32>
    %3 = vector.broadcast %2 : vector<1x32xf32> to vector<8x32xf32>
    %4 = arith.subf %0, %3 : vector<8x32xf32>
    %c0_1 = arith.constant 0 : index
    %c0_2 = arith.constant 0 : index
    %5 = vector.load %arg3[%c0_1, %c0_2] : memref<8x32xf32, #tpu.memory_space<vmem>>, vector<8x32xf32>
    tpu.vector_store %arg3[%c0_1, %c0_2], %4 {strides = array<i32>} : memref<8x32xf32, #tpu.memory_space<vmem>>, vector<8x32xf32>,
    %cst_3 = arith.constant 0.000000e+00 : f32
    %6 = vector.broadcast %cst_3 : f32 to vector<1x32xf32>
    %cst_4 = arith.constant 0.000000e+00 : f32
    %7 = vector.broadcast %cst_4 : f32 to vector<1x32xf32>
    %c0_i32 = arith.constant 0 : i32
    %c8_i32 = arith.constant 8 : i32
    %8 = arith.muli %c0_i32, %c8_i32 : i32
    %9 = tpu.assume_multiple %8, 8 : i32
    %10 = arith.index_cast %9 : i32 to index
    %c0_5 = arith.constant 0 : index
    %11 = vector.load %arg3[%10, %c0_5] : memref<8x32xf32, #tpu.memory_space<vmem>>, vector<8x32xf32>
    %cst_6 = arith.constant 0.000000e+00 : f32
    %12 = vector.broadcast %cst_6 : f32 to vector<8x32xf32>
    %cst_7 = arith.constant 0.000000e+00 : f32
    %13 = vector.broadcast %cst_7 : f32 to vector<8x32xf32>
    %c0_i32_8 = arith.constant 0 : i32
    %c8_i32_9 = arith.constant 8 : i32
    %14 = arith.muli %c0_i32_8, %c8_i32_9 : i32
    %15 = tpu.assume_multiple %14, 8 : i32
    %16 = arith.index_cast %15 : i32 to index
    %c0_10 = arith.constant 0 : index
    %17 = vector.load %arg3[%16, %c0_10] : memref<8x32xf32, #tpu.memory_space<vmem>>, vector<8x32xf32>
    %18 = vector.shape_cast %17 : vector<8x32xf32> to vector<8x1x32xf32>
    %19 = vector.shape_cast %11 : vector<8x32xf32> to vector<1x8x32xf32>
    %20 = vector.broadcast %18 : vector<8x1x32xf32> to vector<8x8x32xf32>
    %21 = vector.broadcast %19 : vector<1x8x32xf32> to vector<8x8x32xf32>
    %22 = arith.cmpf oge, %20, %21 : vector<8x8x32xf32>
    %cst_11 = arith.constant 1.000000e+00 : f32
    %cst_12 = arith.constant 0.000000e+00 : f32
    %23 = vector.broadcast %cst_11 : f32 to vector<8x8x32xf32>
    %24 = vector.broadcast %cst_12 : f32 to vector<8x8x32xf32>
    %25 = arith.select %22, %23, %24 : vector<8x8x32xi1>, vector<8x8x32xf32>
    %cst_13 = arith.constant dense<0.000000e+00> : vector<8x32xf32>
    %26 = vector.multi_reduction <add>, %25, %cst_13 [0] : vector<8x8x32xf32> to vector<8x32xf32>
    %27 = vector.shape_cast %17 : vector<8x32xf32> to vector<8x1x32xf32>
    %28 = vector.broadcast %27 : vector<8x1x32xf32> to vector<8x8x32xf32>
    %29 = arith.mulf %25, %28 : vector<8x8x32xf32>
    %cst_14 = arith.constant dense<0.000000e+00> : vector<8x32xf32>
    %30 = vector.multi_reduction <add>, %29, %cst_14 [0] : vector<8x8x32xf32> to vector<8x32xf32>
    %31 = arith.addf %12, %26 : vector<8x32xf32>
    %32 = arith.addf %13, %30 : vector<8x32xf32>
    %c1_i32 = arith.constant 1 : i32
    %33 = arith.mulf %31, %11 : vector<8x32xf32>
    %cst_15 = arith.constant 1.000000e+00 : f32
    %34 = vector.broadcast %cst_15 : f32 to vector<8x32xf32>
    %35 = arith.subf %32, %34 : vector<8x32xf32>
    %36 = arith.cmpf ogt, %33, %35 : vector<8x32xf32>
    %cst_16 = arith.constant 1.000000e+00 : f32
    %cst_17 = arith.constant 0.000000e+00 : f32
    %37 = vector.broadcast %cst_16 : f32 to vector<8x32xf32>
    %38 = vector.broadcast %cst_17 : f32 to vector<8x32xf32>
    %39 = arith.select %36, %37, %38 : vector<8x32xi1>, vector<8x32xf32>
    %cst_18 = arith.constant dense<0.000000e+00> : vector<32xf32>
    %40 = vector.multi_reduction <add>, %39, %cst_18 [0] : vector<8x32xf32> to vector<32xf32>
    %41 = vector.shape_cast %40 : vector<32xf32> to vector<1x32xf32>
    %42 = arith.mulf %39, %11 : vector<8x32xf32>
    %cst_19 = arith.constant dense<0.000000e+00> : vector<32xf32>
    %43 = vector.multi_reduction <add>, %42, %cst_19 [0] : vector<8x32xf32> to vector<32xf32>
    %44 = vector.shape_cast %43 : vector<32xf32> to vector<1x32xf32>
    %45 = arith.addf %6, %41 : vector<1x32xf32>
    %46 = arith.addf %7, %44 : vector<1x32xf32>
    %c1_i32_20 = arith.constant 1 : i32
    %cst_21 = arith.constant 1.000000e+00 : f32
    %47 = vector.broadcast %cst_21 : f32 to vector<1x32xf32>
    %48 = arith.subf %46, %47 : vector<1x32xf32>
    %49 = arith.divf %48, %45 : vector<1x32xf32>
    %c0_22 = arith.constant 0 : index
    %c0_23 = arith.constant 0 : index
    %50 = vector.load %arg3[%c0_22, %c0_23] : memref<8x32xf32, #tpu.memory_space<vmem>>, vector<8x32xf32>
    %51 = vector.broadcast %49 : vector<1x32xf32> to vector<8x32xf32>
    %52 = arith.subf %50, %51 : vector<8x32xf32>
    %cst_24 = arith.constant 0.000000e+00 : f32
    %53 = vector.broadcast %cst_24 : f32 to vector<8x32xf32>
    %54 = arith.maximumf %52, %53 : vector<8x32xf32>
    %c0_25 = arith.constant 0 : index
    %c0_26 = arith.constant 0 : index
    %55 = vector.load %arg2[%c0_25, %c0_26] : memref<8x32xf32, #tpu.memory_space<vmem>>, vector<8x32xf32>
    tpu.vector_store %arg2[%c0_25, %c0_26], %54 {strides = array<i32>} : memref<8x32xf32, #tpu.memory_space<vmem>>, vector<8x32xf32>,
    return
  }
  func.func @transform_0(%arg0: i32) -> (i32, i32) {
    %c0_i32 = arith.constant 0 : i32
    %c0_i32_0 = arith.constant 0 : i32
    return %c0_i32, %arg0 : i32, i32
  }
  func.func @transform_1(%arg0: i32) -> (i32, i32) {
    %c0_i32 = arith.constant 0 : i32
    %c0_i32_0 = arith.constant 0 : i32
    return %c0_i32, %arg0 : i32, i32
  }
}

</mosaic_0001>

<bundles_post_ra>
// kernel: tpu_custom_call.1
= control target key start
LH: loop header
LB: loop body
LE: loop exit
PB: predicated region body
PF: predicated region fallthrough
CT: control target
= control target key end

     0   :  { %6 = vsyncpa [#allocation4], 0  ;;  %s354_s0 = inlined_call_operand.hbm [shape: f32[8,32], index: 0, kind: input, shape index: {}]   ;;  %s355_s1 = inlined_call_operand.hbm [shape: f32[8,32], index: 1, kind: output, shape index: {}]  }
   0x1   :  { %7 = vsyncpa [#allocation5], 0  ;;  %s279_s6 = smov [#allocation3]   ;;  %s231_s10 = scalar_lea.hbm %s354_s0, 128 }
   0x2   :  { %s14_s7 = sshll.u32 %s279_s6, 4  ;;  %p232_p0 = scmp.ne.s32.totalorder %s354_s0, %s231_s10  ;;  %s15_s7 = int_to_ptr.vmem [resolvable:$true] %s14_s7 }
   0x3   :  { %p235_p1 = scmp.lt.u32.totalorder %s231_s10, %s354_s0 }
   0x5   :  { %p237_p2 = pnand %p235_p1, %p232_p0 }
   0x7   :  { %240 = shalt.err (!%p237_p2)
}
   0x8   :  { %s241_s15 = scalar_lea.vmem %s15_s7, 128  ;;  %p246_p4 = scmp.lt.s32.totalorder %s15_s7, %s15_s7 }
   0x9   :  { %p242_p3 = scmp.ne.s32.totalorder %s15_s7, %s241_s15  ;;  %p247_p5 = scmp.lt.s32.totalorder %s241_s15, %s241_s15 }
   0xb   :  { %p248_p6 = por %p247_p5, %p246_p4 }
   0xd   :  { %p249_p7 = pnand %p248_p6, %p242_p3 }
   0xf   :  { %252 = shalt.err (!%p249_p7)
}
  0x10   :  { %17 = dma.hbm_to_vmem [thread:$0]  %s354_s0, 128, %s15_s7, [#allocation4]  }
  0x11   :  { %275 = dma.done.wait [#allocation4], 128  }
  0x12   :  { %276 = vsyncadd [#allocation4], 4294967168  ;;  %vm22_vm0 = vcmask 261120   ;;  %v21_v0 = vld [vmem:[#allocation3] sm:$0xff]  ;;  %v280_v8 = vmov 1966171168   ;;  %v38_v10 = vlaneseq }
  0x13   :  { %v23_v1 = vsel %vm22_vm0, %v21_v0, -inf  ;;  %v36_v9 = vunpack.c.l.s4 %v280_v8  ;;  %v281_v36 = vmov 0.0   ;;  %s282_s0 = smov [#allocation6]  }
  0x14   :  { %v24_v2 = vrot.slane %v23_v1, 4  ;;  %v39_v13 = vshrl.u32 %v38_v10, 7  ;;  %s213_s18 = sshll.u32 %s282_s0, 4  ;;  %s214_s18 = int_to_ptr.vmem [resolvable:$true] %s213_s18 }
  0x15   :  { %v37_v12 = vunpack.c.0.s8 %v36_v9  ;;  %s253_s19 = scalar_lea.vmem %s214_s18, 128  ;;  %p258_p9 = scmp.lt.s32.totalorder %s214_s18, %s214_s18 }
  0x16   :  { %v25_v3 = vmax.f32 %v23_v1, %v24_v2  ;;  %v85_v18 = vsub.s32 0, %v39_v13  ;;  %p254_p8 = scmp.ne.s32.totalorder %s214_s18, %s253_s19  ;;  %p259_p10 = scmp.lt.s32.totalorder %s253_s19, %s253_s19 }
  0x17   :  { %v40_v14 = vsub.s32 %v37_v12, %v39_v13 }
  0x18   :  { %v26_v4 = vrot.slane %v25_v3, 2  ;;  %p260_p11 = por %p259_p10, %p258_p9 }
  0x1a   :  { %v27_v5 = vmax.f32 %v25_v3, %v26_v4  ;;  %p261_p12 = pnand %p260_p11, %p254_p8 }
  0x1c   :  { %v28_v6 = vrot.slane %v27_v5, 1 }
  0x1e   :  { %v29_v7 = vmax.f32 %v27_v5, %v28_v6 }
  0x20   :  { %v30_v11 = vsub.f32 %v21_v0, %v29_v7 }
  0x22   :  { %31 = vst.msk [vmem:[#allocation2] sm:$0xff] %vm22_vm0, %v30_v11 }
  0x29   :  { %v307_v15 = vld [vmem:[#allocation2] sm:$0xff] }
  0x2a   :  { %v34_v16 = vcombine.high %v307_v15, %v307_v15  ;;  %v41_v17 = vrot.slane %v307_v15, %v40_v14 }
  0x2c   :  { %v48_v19 = vrot.slane %v34_v16, %v40_v14  ;;  %v49_v20 = vcombine.high %v41_v17, %v41_v17  ;;  %v57_v21 = vrot.slane %v41_v17, %v40_v14 }
  0x2e   :  { %v50_v22 = vcombine.high %v48_v19, %v48_v19  ;;  %v64_v23 = vrot.slane %v48_v19, %v40_v14  ;;  %v71_v24 = vrot.slane %v49_v20, %v40_v14  ;;  %v79_v25 = vcombine.high %v57_v21, %v57_v21 }
  0x2f   :  { %v86_v26 = vrot.slane %v57_v21, %v85_v18 }
  0x30   :  { %v78_v27 = vrot.slane %v50_v22, %v40_v14  ;;  %v81_v28 = vcombine.high %v71_v24, %v71_v24  ;;  %v90_v29 = vrot.slane %v71_v24, %v85_v18  ;;  %v94_v30 = vrot.slane %v79_v25, %v85_v18 }
  0x31   :  { %vm123_vm1 = vcmp.ge.f32.partialorder %v86_v26, %v307_v15  ;;  %v80_v31 = vcombine.high %v64_v23, %v64_v23  ;;  %v102_v33 = vrot.slane %v64_v23, %v85_v18 }
  0x32   :  { %v98_v32 = vrot.slane %v81_v28, %v85_v18  ;;  %vm124_vm2 = vcmp.ge.f32.partialorder %v90_v29, %v307_v15  ;;  %vm125_vm3 = vcmp.ge.f32.partialorder %v94_v30, %v307_v15  ;;  %v82_v34 = vcombine.high %v78_v27, %v78_v27 }
  0x33   :  { %v106_v35 = vrot.slane %v78_v27, %v85_v18  ;;  %v131_v37 = vsel %vm123_vm1, 1.0, %v281_v36  ;;  %v132_v38 = vsel %vm124_vm2, 1.0, %v281_v36  ;;  %v110_v39 = vrot.slane %v80_v31, %v85_v18 }
  0x34   :  { %vm126_vm4 = vcmp.ge.f32.partialorder %v98_v32, %v307_v15  ;;  %v133_v40 = vsel %vm125_vm3, 1.0, %v281_v36  ;;  %vm127_vm5 = vcmp.ge.f32.partialorder %v102_v33, %v307_v15  ;;  %v139_v41 = vsel %vm22_vm0, %v131_v37, 0.0 }
  0x35   :  { %v140_v42 = vsel %vm22_vm0, %v132_v38, 0.0  ;;  %v114_v43 = vrot.slane %v82_v34, %v85_v18  ;;  %vm128_vm6 = vcmp.ge.f32.partialorder %v106_v35, %v307_v15  ;;  %v134_v44 = vsel %vm126_vm4, 1.0, %v281_v36 }
  0x36   :  { %v141_v45 = vadd.f32 %v140_v42, %v139_v41  ;;  %v142_v46 = vsel %vm22_vm0, %v133_v40, 0.0  ;;  %v154_v47 = vmul.f32 %v131_v37, %v86_v26  ;;  %v155_v48 = vmul.f32 %v132_v38, %v90_v29 }
  0x37   :  { %v156_v49 = vmul.f32 %v133_v40, %v94_v30  ;;  %vm129_vm7 = vcmp.ge.f32.partialorder %v110_v39, %v307_v15  ;;  %v135_v50 = vsel %vm127_vm5, 1.0, %v281_v36  ;;  %v144_v52 = vsel %vm22_vm0, %v134_v44, 0.0 }
  0x38   :  { %v143_v51 = vadd.f32 %v142_v46, %v141_v45  ;;  %v157_v53 = vmul.f32 %v134_v44, %v98_v32  ;;  %v162_v54 = vsel %vm22_vm0, %v154_v47, 0.0  ;;  %v163_v55 = vsel %vm22_vm0, %v155_v48, 0.0 }
  0x39   :  { %v136_v56 = vsel %vm128_vm6, 1.0, %v281_v36  ;;  %v164_v58 = vadd.f32 %v163_v55, %v162_v54  ;;  %vm130_vm8 = vcmp.ge.f32.partialorder %v114_v43, %v307_v15  ;;  %v146_v59 = vsel %vm22_vm0, %v135_v50, 0.0 }
  0x3a   :  { %v145_v57 = vadd.f32 %v144_v52, %v143_v51  ;;  %v158_v60 = vmul.f32 %v135_v50, %v102_v33  ;;  %v165_v61 = vsel %vm22_vm0, %v156_v49, 0.0  ;;  %v137_v62 = vsel %vm129_vm7, 1.0, %v281_v36 }
  0x3b   :  { %v166_v0 = vadd.f32 %v165_v61, %v164_v58  ;;  %v148_v1 = vsel %vm22_vm0, %v136_v56, 0.0  ;;  %v159_v2 = vmul.f32 %v136_v56, %v106_v35  ;;  %v167_v3 = vsel %vm22_vm0, %v157_v53, 0.0 }
  0x3c   :  { %v147_v63 = vadd.f32 %v146_v59, %v145_v57  ;;  %v138_v4 = vsel %vm130_vm8, 1.0, %v281_v36  ;;  %v150_v7 = vsel %vm22_vm0, %v137_v62, 0.0  ;;  %v160_v8 = vmul.f32 %v137_v62, %v110_v39 }
  0x3d   :  { %v168_v6 = vadd.f32 %v167_v3, %v166_v0  ;;  %v169_v9 = vsel %vm22_vm0, %v158_v60, 0.0  ;;  %v161_v12 = vmul.f32 %v138_v4, %v114_v43  ;;  %v171_v13 = vsel %vm22_vm0, %v159_v2, 0.0 }
  0x3e   :  { %v149_v5 = vadd.f32 %v148_v1, %v147_v63  ;;  %v152_v16 = vsel %vm22_vm0, %v138_v4, 0.0  ;;  %v173_v17 = vsel %vm22_vm0, %v160_v8, 0.0 }
  0x3f   :  { %v170_v11 = vadd.f32 %v169_v9, %v168_v6  ;;  %v175_v20 = vsel %vm22_vm0, %v161_v12, 0.0 }
  0x40   :  { %v151_v10 = vadd.f32 %v150_v7, %v149_v5 }
  0x41   :  { %v172_v14 = vadd.f32 %v171_v13, %v170_v11 }
  0x42   :  { %v153_v18 = vadd.f32 %v152_v16, %v151_v10 }
  0x43   :  { %v174_v19 = vadd.f32 %v173_v17, %v172_v14 }
  0x44   :  { %v179_v22 = vmul.f32 %v153_v18, %v307_v15 }
  0x45   :  { %v176_v21 = vadd.f32 %v175_v20, %v174_v19 }
  0x47   :  { %v222_v23 = vadd.f32 -1.0, %v176_v21 }
  0x49   :  { %vm181_vm9 = vcmp.gt.f32.partialorder %v179_v22, %v222_v23 }
  0x4a   :  { %v182_v24 = vsel %vm181_vm9, 1.0, %v281_v36 }
  0x4b   :  { %v183_v25 = vsel %vm22_vm0, %v182_v24, 0.0  ;;  %v190_v26 = vmul.f32 %v182_v24, %v307_v15 }
  0x4c   :  { %v184_v27 = vrot.slane %v183_v25, 4 }
  0x4d   :  { %v191_v28 = vsel %vm22_vm0, %v190_v26, 0.0 }
  0x4e   :  { %v185_v29 = vadd.f32 %v184_v27, %v183_v25  ;;  %v192_v30 = vrot.slane %v191_v28, 4 }
  0x50   :  { %v186_v31 = vrot.slane %v185_v29, 2  ;;  %v193_v32 = vadd.f32 %v192_v30, %v191_v28 }
  0x52   :  { %v187_v33 = vadd.f32 %v186_v31, %v185_v29  ;;  %v194_v34 = vrot.slane %v193_v32, 2 }
  0x54   :  { %v188_v35 = vrot.slane %v187_v33, 1  ;;  %v195_v37 = vadd.f32 %v194_v34, %v193_v32 }
  0x56   :  { %v189_v38 = vadd.f32 %v188_v35, %v187_v33  ;;  %v196_v39 = vrot.slane %v195_v37, 1 }
  0x58   :  { %229 = vrcp.f32 %v189_v38  ;;  %v197_v40 = vadd.f32 %v196_v39, %v195_v37 }
  0x5a   :  { %v223_v36 = vadd.f32 -1.0, %v197_v40 }
  0x62   :  { %v230_v41 = vpop.eup %229 }
  0x63   :  { %v202_v42 = vmul.f32 %v230_v41, %v223_v36 }
  0x65   :  { %v204_v43 = vsub.f32 %v307_v15, %v202_v42 }
  0x67   :  { %v205_v44 = vmax.f32 %v204_v43, 0.0 }
  0x69   :  { %206 = vst.msk [vmem:[#allocation6] sm:$0xff] %vm22_vm0, %v205_v44 }
  0x6a   :  { %264 = shalt.err (!%p261_p12)
}
  0x6b   :  { %s265_s22 = scalar_lea.hbm %s355_s1, 128 }
  0x6c   :  { %p266_p13 = scmp.ne.s32.totalorder %s355_s1, %s265_s22  ;;  %p269_p0 = scmp.lt.u32.totalorder %s265_s22, %s355_s1 }
  0x6e   :  { %p271_p1 = pnand %p269_p0, %p266_p13 }
  0x70   :  { %274 = shalt.err (!%p271_p1)
}
  0x71   :  { %216 = dma.vmem_to_hbm [thread:$0]  %s214_s18, 128, %s355_s1, [#allocation5]  }
  0x72   :  { %277 = dma.done.wait [#allocation5], 128  }
  0x73   :  { %278 = vsyncadd [#allocation5], 4294967168 }
  0x74   :  { %220 = vsyncpa [#allocation4], 1 }
  0x75   :  { %221 = vsyncpa [#allocation5], 1 }

</bundles_post_ra>
